<compile_context>
chip_gen: v5e
topology: v5e:2x2
jax: 0.10.0
libtpu: 0.0.40
codegen_flags: <defaults>
</compile_context>

<pallas_src>
import functools

import jax
import jax.numpy as jnp
from jax.experimental import pallas as pl
from jax.experimental.pallas import tpu as pltpu


# Safe on v7x (64 MiB physical); plenty of headroom on v5e/v6e (128 MiB).
_VMEM_LIMIT = 48 * 1024 * 1024


def _pick_block(dim, target, aligns):
    """Largest divisor of `dim` <= target that is a multiple of the best alignment.

    Fails loudly instead of silently returning the full dimension (VMEM risk).
    """
    if dim <= target:
        return dim
    for align in aligns:
        for cand in range(min(target, dim), align - 1, -1):
            if dim % cand == 0 and cand % align == 0:
                return cand
    raise ValueError(
        f"no tile <= {target} aligned to any of {aligns} divides dim={dim}; "
        "pad the input to an aligned size")


# ----------------------------------------------------------------------------
# Kernel 1: fused LoRA linear
#   y = x @ W^T + b + (x @ A^T) @ (scale*B)^T
# grid = (row tiles i [parallel], col tiles j [arbitrary], K tiles k [arbitrary])
# The low-rank projection xa = x @ A^T is accumulated into a (TM, r) scratch only
# during the j == 0 pass and reused for all column tiles of the same row tile.
# ----------------------------------------------------------------------------
def _lora_linear_kernel(x_ref, wt_ref, b_ref, at_ref, bt_ref, o_ref,
                        acc_ref, xa_ref):
    j = pl.program_id(1)
    k = pl.program_id(2)
    nk = pl.num_programs(2)

    x = x_ref[...].astype(jnp.bfloat16)                       # (TM, TK)

    @pl.when(k == 0)
    def _():
        acc_ref[...] = jnp.zeros_like(acc_ref)

    @pl.when(jnp.logical_and(j == 0, k == 0))
    def _():
        xa_ref[...] = jnp.zeros_like(xa_ref)

    # Hoisted low-rank path: only on the first column tile of each row tile.
    @pl.when(j == 0)
    def _():
        xa_ref[...] += jnp.dot(x, at_ref[...],
                               preferred_element_type=jnp.float32)   # (TM, r)

    acc_ref[...] += jnp.dot(x, wt_ref[...],
                            preferred_element_type=jnp.float32)      # (TM, TN)

    @pl.when(k == nk - 1)
    def _():
        res = acc_ref[...] + jnp.dot(xa_ref[...].astype(jnp.bfloat16), bt_ref[...],
                                     preferred_element_type=jnp.float32)
        o_ref[...] = (res + b_ref[...]).astype(o_ref.dtype)


def lora_linear(x, wt, bias, at, bt, *, row_block=512, col_block=512,
                k_block=1024, out_dtype=jnp.bfloat16):
    M, K = x.shape
    NO = wt.shape[1]
    r = at.shape[1]
    TM = _pick_block(M, row_block, (256, 128, 8))
    TN = _pick_block(NO, col_block, (256, 128))
    TK = _pick_block(K, k_block, (256, 128))
    return pl.pallas_call(
        _lora_linear_kernel,
        out_shape=jax.ShapeDtypeStruct((M, NO), out_dtype),
        grid=(M // TM, NO // TN, K // TK),
        in_specs=[
            pl.BlockSpec((TM, TK), lambda i, j, k: (i, k)),   # x rows (bf16)
            pl.BlockSpec((TK, TN), lambda i, j, k: (k, j)),   # W^T tile (bf16)
            pl.BlockSpec((1, TN), lambda i, j, k: (0, j)),    # bias (fp32)
            pl.BlockSpec((TK, r), lambda i, j, k: (k, 0)),    # A^T tile (tiny)
            pl.BlockSpec((r, TN), lambda i, j, k: (0, j)),    # (scale*B)^T (tiny)
        ],
        out_specs=pl.BlockSpec((TM, TN), lambda i, j, k: (i, j)),
        scratch_shapes=[pltpu.VMEM((TM, TN), jnp.float32),    # matmul accumulator
                        pltpu.VMEM((TM, r), jnp.float32)],    # hoisted x @ A^T
        compiler_params=pltpu.CompilerParams(
            dimension_semantics=("parallel", "arbitrary", "arbitrary"),
            vmem_limit_bytes=_VMEM_LIMIT),
    )(x, wt, bias, at, bt)


# ----------------------------------------------------------------------------
# Kernel 2: plain tiled linear  y = x @ W^T + b  (output projection), K-tiled.
# ----------------------------------------------------------------------------
def _linear_kernel(x_ref, wt_ref, b_ref, o_ref, acc_ref):
    k = pl.program_id(2)

    @pl.when(k == 0)
    def _():
        acc_ref[...] = jnp.zeros_like(acc_ref)

    acc_ref[...] += jnp.dot(x_ref[...].astype(jnp.bfloat16), wt_ref[...],
                            preferred_element_type=jnp.float32)

    @pl.when(k == pl.num_programs(2) - 1)
    def _():
        o_ref[...] = (acc_ref[...] + b_ref[...]).astype(o_ref.dtype)


def linear(x, wt, bias, *, row_block=512, col_block=512, k_block=1024,
           out_dtype=jnp.float32):
    M, K = x.shape
    NO = wt.shape[1]
    TM = _pick_block(M, row_block, (256, 128, 8))
    TN = _pick_block(NO, col_block, (256, 128))
    TK = _pick_block(K, k_block, (256, 128))
    return pl.pallas_call(
        _linear_kernel,
        out_shape=jax.ShapeDtypeStruct((M, NO), out_dtype),
        grid=(M // TM, NO // TN, K // TK),
        in_specs=[
            pl.BlockSpec((TM, TK), lambda i, j, k: (i, k)),
            pl.BlockSpec((TK, TN), lambda i, j, k: (k, j)),
            pl.BlockSpec((1, TN), lambda i, j, k: (0, j)),
        ],
        out_specs=pl.BlockSpec((TM, TN), lambda i, j, k: (i, j)),
        scratch_shapes=[pltpu.VMEM((TM, TN), jnp.float32)],
        compiler_params=pltpu.CompilerParams(
            dimension_semantics=("parallel", "arbitrary", "arbitrary"),
            vmem_limit_bytes=_VMEM_LIMIT),
    )(x, wt, bias)


# ----------------------------------------------------------------------------
# Kernel 3: scaled-dot-product attention.
#   grid = (batch [parallel], query blocks [parallel], head blocks [arbitrary]).
#   1/sqrt(hd) scaling is pre-folded into the Q projection, so no per-step mul.
#   The head-averaged attention weights are accumulated in-kernel across the
#   trailing head axis into a (1, TL, S) fp32 block (never a full (N*H,L,S)
#   matrix in HBM).  Softmax uses an exact divide so weights sum to 1.
# ----------------------------------------------------------------------------
def _attn_kernel(inv_heads, q_ref, k_ref, v_ref, o_ref, pavg_ref):
    hb = pl.program_id(2)
    q = q_ref[0]                                    # (Hb, TL, hd) bf16 (pre-scaled)
    k = k_ref[0]                                    # (Hb, S, hd)  bf16
    v = v_ref[0]                                    # (Hb, S, hd)  bf16

    s = jnp.einsum("hld,hsd->hls", q, k,
                   preferred_element_type=jnp.float32)          # (Hb, TL, S) fp32
    m = jnp.max(s, axis=-1, keepdims=True)
    e = jnp.exp(s - m)
    p = e / jnp.sum(e, axis=-1, keepdims=True)                  # exact normalization

    o_ref[0] = jnp.einsum("hls,hsd->hld", p.astype(jnp.bfloat16), v,
                          preferred_element_type=jnp.float32).astype(o_ref.dtype)

    @pl.when(hb == 0)
    def _():
        pavg_ref[...] = jnp.zeros_like(pavg_ref)
    pavg_ref[0] += jnp.sum(p, axis=0) * inv_heads


def attention(q, k, v, *, head_block=4, l_block=256):
    N, H, L, hd = q.shape
    S = k.shape[2]
    Hb = min(H, head_block)
    while H % Hb:
        Hb -= 1
    TL = _pick_block(L, l_block, (128, 8))
    kernel = functools.partial(_attn_kernel, 1.0 / float(H))
    return pl.pallas_call(
        kernel,
        out_shape=(jax.ShapeDtypeStruct((N, H, L, hd), jnp.bfloat16),
                   jax.ShapeDtypeStruct((N, L, S), jnp.float32)),
        grid=(N, L // TL, H // Hb),
        in_specs=[pl.BlockSpec((1, Hb, TL, hd), lambda n, lb, h: (n, h, lb, 0)),
                  pl.BlockSpec((1, Hb, S, hd), lambda n, lb, h: (n, h, 0, 0)),
                  pl.BlockSpec((1, Hb, S, hd), lambda n, lb, h: (n, h, 0, 0))],
        out_specs=(pl.BlockSpec((1, Hb, TL, hd), lambda n, lb, h: (n, h, lb, 0)),
                   # same block across the (trailing) head axis -> VMEM accumulator
                   pl.BlockSpec((1, TL, S), lambda n, lb, h: (n, lb, 0))),
        compiler_params=pltpu.CompilerParams(
            dimension_semantics=("parallel", "parallel", "arbitrary"),
            vmem_limit_bytes=_VMEM_LIMIT),
    )(q, k, v)


# ----------------------------------------------------------------------------
# One-time parameter prep (call OUTSIDE the jitted forward): transpose + bf16
# cast of all projection weights, LoRA scale folded into B^T, and the 1/sqrt(hd)
# attention scaling folded into the Q chunk (weight, bias and B_q).
# ----------------------------------------------------------------------------
def prepare_lora_mha_params(params, num_heads, scale):
    E = params["out_proj_weight"].shape[0]
    hd = E // num_heads
    q_scaling = 1.0 / float(hd) ** 0.5

    W = params["in_proj_weight"]
    b = params["in_proj_bias"]
    A = params["lora_A"]
    B = params["lora_B"]

    chunks = []
    for c in range(3):                                   # kv_only=False -> Q, K, V
        s = q_scaling if c == 0 else 1.0
        wt = (s * W[c * E:(c + 1) * E]).T.astype(jnp.bfloat16)       # (E, E)
        bias = (s * b[c * E:(c + 1) * E]).reshape(1, E).astype(jnp.float32)
        at = A[c].T.astype(jnp.bfloat16)                             # (E, r)
        bt = (s * scale * B[c]).T.astype(jnp.bfloat16)               # (r, E)
        chunks.append((wt, bias, at, bt))

    return {
        "chunks": tuple(chunks),
        "wo_t": params["out_proj_weight"].T.astype(jnp.bfloat16),
        "out_bias": params["out_proj_bias"].reshape(1, E).astype(jnp.float32),
    }


# ----------------------------------------------------------------------------
# LoRA_MHA forward (kv_only=False, bias_k=bias_v=None, add_zero_attn=False,
# dropout=0.0, need_weights=True, average_attn_weights=True)
# ----------------------------------------------------------------------------
def lora_mha_forward(query, key, value, prepared, num_heads, *,
                     head_block=4, l_block=256):
    L, N, E = query.shape
    S = key.shape[0]
    H = num_heads
    hd = E // H

    # bf16 activations: single cast, halves all downstream activation HBM traffic.
    qx = query.reshape(L * N, E).astype(jnp.bfloat16)
    kx = key.reshape(S * N, E).astype(jnp.bfloat16)
    vx = value.reshape(S * N, E).astype(jnp.bfloat16)

    c_q, c_k, c_v = prepared["chunks"]
    q = lora_linear(qx, *c_q)      # (L*N, E) bf16, 1/sqrt(hd) already folded in
    k = lora_linear(kx, *c_k)      # (S*N, E) bf16
    v = lora_linear(vx, *c_v)      # (S*N, E) bf16

    # head split (JAX glue, bf16).
    qh = q.reshape(L, N, H, hd).transpose(1, 2, 0, 3)
    kh = k.reshape(S, N, H, hd).transpose(1, 2, 0, 3)
    vh = v.reshape(S, N, H, hd).transpose(1, 2, 0, 3)

    oh, attn_weights = attention(qh, kh, vh, head_block=head_block, l_block=l_block)

    # merge heads (glue, bf16) and output projection (fp32 out).
    o = oh.transpose(2, 0, 1, 3).reshape(L * N, E)
    out = linear(o, prepared["wo_t"], prepared["out_bias"])

    return out.reshape(L, N, E), attn_weights


# ----------------------------------------------------------------------------
# pure-JAX fp32 reference (mirrors torch.nn.functional.multi_head_attention_forward)
# ----------------------------------------------------------------------------
def ref_forward(query, key, value, params, num_heads, scale):
    L, N, E = query.shape
    S = key.shape[0]
    H = num_heads
    hd = E // H
    lora_A, lora_B = params["lora_A"], params["lora_B"]
    delta = jnp.concatenate(
        [scale * lora_B[i] @ lora_A[i] for i in range(lora_A.shape[0])], axis=0)
    W = params["in_proj_weight"] + delta
    b = params["in_proj_bias"]
    q = query.reshape(L * N, E) @ W[:E].T + b[:E]
    k = key.reshape(S * N, E) @ W[E:2 * E].T + b[E:2 * E]
    v = value.reshape(S * N, E) @ W[2 * E:].T + b[2 * E:]
    qh = q.reshape(L, N * H, hd).transpose(1, 0, 2) * (float(hd) ** -0.5)
    kh = k.reshape(S, N * H, hd).transpose(1, 0, 2)
    vh = v.reshape(S, N * H, hd).transpose(1, 0, 2)
    s = jnp.einsum("bld,bsd->bls", qh, kh)
    p = jax.nn.softmax(s, axis=-1)
    o = jnp.einsum("bls,bsd->bld", p, vh)
    o = o.transpose(1, 0, 2).reshape(L * N, E) @ params["out_proj_weight"].T \
        + params["out_proj_bias"]
    return o.reshape(L, N, E), p.reshape(N, H, L, S).mean(axis=1)


if __name__ == "__main__":
    # small shapes consistent with the module
    L, N, E, H = 8, 2, 32, 4          # seq, batch, embed_dim, num_heads
    RANK, SCALE = 4, 2.0
    MUL = 3                           # kv_only=False

    key0 = jax.random.PRNGKey(0)
    ks = jax.random.split(key0, 10)

    # deterministic parameter init (shapes from LoRA_MHA.__init__ / nn.MultiheadAttention).
    # Note: the module zero-inits lora_B; we use small random values so the
    # LoRA low-rank path is actually exercised.
    params = {
        "in_proj_weight": 0.1 * jax.random.normal(ks[0], (3 * E, E), jnp.float32),
        "in_proj_bias":   0.1 * jax.random.normal(ks[1], (3 * E,), jnp.float32),
        "out_proj_weight": 0.1 * jax.random.normal(ks[2], (E, E), jnp.float32),
        "out_proj_bias":   0.1 * jax.random.normal(ks[3], (E,), jnp.float32),
        "lora_A": 0.1 * jax.random.normal(ks[4], (MUL, RANK, E), jnp.float32),
        "lora_B": 0.1 * jax.random.normal(ks[5], (MUL, E, RANK), jnp.float32),
    }

    query = jax.random.normal(ks[6], (L, N, E), jnp.float32)
    k_x = jax.random.normal(ks[7], (L, N, E), jnp.float32)
    v_x = jax.random.normal(ks[8], (L, N, E), jnp.float32)

    # Weight prep once (outside jit): transposes / bf16 casts / scale folds.
    prepared = prepare_lora_mha_params(params, H, SCALE)

    # head_block=2 at H=4 exercises the multi-step head-average accumulation path.
    fwd = jax.jit(lambda q, k, v, p: lora_mha_forward(q, k, v, p, H, head_block=2))
    out, attn_w = jax.block_until_ready(fwd(query, k_x, v_x, prepared))
    ref_out, ref_w = ref_forward(query, k_x, v_x, params, H, SCALE)

    assert out.shape == (L, N, E) and attn_w.shape == (N, L, L)
    # bf16 MXU inputs / bf16 intermediates (fp32 accumulation) -> loose tolerances.
    assert jnp.allclose(out, ref_out, atol=5e-2, rtol=5e-2), \
        float(jnp.max(jnp.abs(out - ref_out)))
    assert jnp.allclose(attn_w, ref_w, atol=2e-2, rtol=2e-2), \
        float(jnp.max(jnp.abs(attn_w - ref_w)))
    print("KERNEL_OK")
</pallas_src>

<mosaic_0001>
module attributes {stable_mosaic.version = 11 : i64} {
  func.func @_lora_linear_kernel(%arg0: i32, %arg1: i32, %arg2: i32, %arg3: memref<16x32xbf16, #tpu.memory_space<vmem>>, %arg4: memref<32x32xbf16, #tpu.memory_space<vmem>>, %arg5: memref<1x32xf32, #tpu.memory_space<vmem>>, %arg6: memref<32x4xbf16, #tpu.memory_space<vmem>>, %arg7: memref<4x32xbf16, #tpu.memory_space<vmem>>, %arg8: memref<16x32xbf16, #tpu.memory_space<vmem>>, %arg9: memref<16x32xf32, #tpu.memory_space<vmem>>, %arg10: memref<16x4xf32, #tpu.memory_space<vmem>>) attributes {dimension_semantics = [#tpu.dimension_semantics<parallel>, #tpu.dimension_semantics<arbitrary>, #tpu.dimension_semantics<arbitrary>], iteration_bounds = array<i64: 1, 1, 1>, scalar_prefetch = 0 : i64, scratch_operands = 2 : i64, tpu.core_type = #tpu.core_type<tc>, window_params = [{transform_indices = @transform_0, window_bounds = array<i64: 16, 32>}, {transform_indices = @transform_1, window_bounds = array<i64: 32, 32>}, {transform_indices = @transform_2, window_bounds = array<i64: 1, 32>}, {transform_indices = @transform_3, window_bounds = array<i64: 32, 4>}, {transform_indices = @transform_4, window_bounds = array<i64: 4, 32>}, {transform_indices = @transform_5, window_bounds = array<i64: 16, 32>}]} {
    %c0 = arith.constant 0 : index
    %c0_0 = arith.constant 0 : index
    %0 = vector.load %arg3[%c0, %c0_0] : memref<16x32xbf16, #tpu.memory_space<vmem>>, vector<16x32xbf16>
    %c0_i32 = arith.constant 0 : i32
    %1 = arith.cmpi eq, %arg2, %c0_i32 : i32
    %2 = arith.extui %1 : i1 to i32
    %c0_i32_1 = arith.constant 0 : i32
    %3 = arith.cmpi ne, %2, %c0_i32_1 : i32
    scf.if %3 {
      %cst_15 = arith.constant 0.000000e+00 : f32
      %20 = vector.broadcast %cst_15 : f32 to vector<16x32xf32>
      %c0_16 = arith.constant 0 : index
      %c0_17 = arith.constant 0 : index
      %21 = vector.load %arg9[%c0_16, %c0_17] : memref<16x32xf32, #tpu.memory_space<vmem>>, vector<16x32xf32>
      tpu.vector_store %arg9[%c0_16, %c0_17], %20 {strides = array<i32>} : memref<16x32xf32, #tpu.memory_space<vmem>>, vector<16x32xf32>,
    } else {
    }
    %c0_i32_2 = arith.constant 0 : i32
    %4 = arith.cmpi eq, %arg1, %c0_i32_2 : i32
    %c0_i32_3 = arith.constant 0 : i32
    %5 = arith.cmpi eq, %arg2, %c0_i32_3 : i32
    %6 = arith.andi %4, %5 : i1
    %7 = arith.extui %6 : i1 to i32
    %c0_i32_4 = arith.constant 0 : i32
    %8 = arith.cmpi ne, %7, %c0_i32_4 : i32
    scf.if %8 {
      %cst_15 = arith.constant 0.000000e+00 : f32
      %20 = vector.broadcast %cst_15 : f32 to vector<16x4xf32>
      %c0_16 = arith.constant 0 : index
      %c0_17 = arith.constant 0 : index
      %21 = vector.load %arg10[%c0_16, %c0_17] : memref<16x4xf32, #tpu.memory_space<vmem>>, vector<16x4xf32>
      tpu.vector_store %arg10[%c0_16, %c0_17], %20 {strides = array<i32>} : memref<16x4xf32, #tpu.memory_space<vmem>>, vector<16x4xf32>,
    } else {
    }
    %c0_i32_5 = arith.constant 0 : i32
    %9 = arith.cmpi eq, %arg1, %c0_i32_5 : i32
    %10 = arith.extui %9 : i1 to i32
    %c0_i32_6 = arith.constant 0 : i32
    %11 = arith.cmpi ne, %10, %c0_i32_6 : i32
    scf.if %11 {
      %c0_15 = arith.constant 0 : index
      %c0_16 = arith.constant 0 : index
      %20 = vector.load %arg10[%c0_15, %c0_16] : memref<16x4xf32, #tpu.memory_space<vmem>>, vector<16x4xf32>
      %c0_17 = arith.constant 0 : index
      %c0_18 = arith.constant 0 : index
      %21 = vector.load %arg6[%c0_17, %c0_18] : memref<32x4xbf16, #tpu.memory_space<vmem>>, vector<32x4xbf16>
      %cst_19 = arith.constant dense<0.000000e+00> : vector<16x4xf32>
      %22 = tpu.matmul %0, %21, %cst_19 {dimension_numbers = #tpu.dot_dimension_numbers<[1], [0], [0], [1], [0, 0, 1, 1], [], []>} : vector<16x32xbf16>, vector<32x4xbf16>, vector<16x4xf32> -> vector<16x4xf32>
      %23 = arith.addf %20, %22 : vector<16x4xf32>
      %c0_20 = arith.constant 0 : index
      %c0_21 = arith.constant 0 : index
      %24 = vector.load %arg10[%c0_20, %c0_21] : memref<16x4xf32, #tpu.memory_space<vmem>>, vector<16x4xf32>
      tpu.vector_store %arg10[%c0_20, %c0_21], %23 {strides = array<i32>} : memref<16x4xf32, #tpu.memory_space<vmem>>, vector<16x4xf32>,
    } else {
    }
    %c0_7 = arith.constant 0 : index
    %c0_8 = arith.constant 0 : index
    %12 = vector.load %arg9[%c0_7, %c0_8] : memref<16x32xf32, #tpu.memory_space<vmem>>, vector<16x32xf32>
    %c0_9 = arith.constant 0 : index
    %c0_10 = arith.constant 0 : index
    %13 = vector.load %arg4[%c0_9, %c0_10] : memref<32x32xbf16, #tpu.memory_space<vmem>>, vector<32x32xbf16>
    %cst = arith.constant dense<0.000000e+00> : vector<16x32xf32>
    %14 = tpu.matmul %0, %13, %cst {dimension_numbers = #tpu.dot_dimension_numbers<[1], [0], [0], [1], [0, 0, 1, 1], [], []>} : vector<16x32xbf16>, vector<32x32xbf16>, vector<16x32xf32> -> vector<16x32xf32>
    %15 = arith.addf %12, %14 : vector<16x32xf32>
    %c0_11 = arith.constant 0 : index
    %c0_12 = arith.constant 0 : index
    %16 = vector.load %arg9[%c0_11, %c0_12] : memref<16x32xf32, #tpu.memory_space<vmem>>, vector<16x32xf32>
    tpu.vector_store %arg9[%c0_11, %c0_12], %15 {strides = array<i32>} : memref<16x32xf32, #tpu.memory_space<vmem>>, vector<16x32xf32>,
    %c0_i32_13 = arith.constant 0 : i32
    %17 = arith.cmpi eq, %arg2, %c0_i32_13 : i32
    %18 = arith.extui %17 : i1 to i32
    %c0_i32_14 = arith.constant 0 : i32
    %19 = arith.cmpi ne, %18, %c0_i32_14 : i32
    scf.if %19 {
      %c0_15 = arith.constant 0 : index
      %c0_16 = arith.constant 0 : index
      %20 = vector.load %arg9[%c0_15, %c0_16] : memref<16x32xf32, #tpu.memory_space<vmem>>, vector<16x32xf32>
      %c0_17 = arith.constant 0 : index
      %c0_18 = arith.constant 0 : index
      %21 = vector.load %arg10[%c0_17, %c0_18] : memref<16x4xf32, #tpu.memory_space<vmem>>, vector<16x4xf32>
      %22 = arith.truncf %21 : vector<16x4xf32> to vector<16x4xbf16>
      %c0_19 = arith.constant 0 : index
      %c0_20 = arith.constant 0 : index
      %23 = vector.load %arg7[%c0_19, %c0_20] : memref<4x32xbf16, #tpu.memory_space<vmem>>, vector<4x32xbf16>
      %cst_21 = arith.constant dense<0.000000e+00> : vector<16x32xf32>
      %24 = tpu.matmul %22, %23, %cst_21 {dimension_numbers = #tpu.dot_dimension_numbers<[1], [0], [0], [1], [0, 0, 1, 1], [], []>} : vector<16x4xbf16>, vector<4x32xbf16>, vector<16x32xf32> -> vector<16x32xf32>
      %25 = arith.addf %20, %24 : vector<16x32xf32>
      %c0_22 = arith.constant 0 : index
      %c0_23 = arith.constant 0 : index
      %26 = vector.load %arg5[%c0_22, %c0_23] : memref<1x32xf32, #tpu.memory_space<vmem>>, vector<1x32xf32>
      %27 = vector.broadcast %26 : vector<1x32xf32> to vector<16x32xf32>
      %28 = arith.addf %25, %27 : vector<16x32xf32>
      %29 = arith.truncf %28 : vector<16x32xf32> to vector<16x32xbf16>
      %c0_24 = arith.constant 0 : index
      %c0_25 = arith.constant 0 : index
      %30 = vector.load %arg8[%c0_24, %c0_25] : memref<16x32xbf16, #tpu.memory_space<vmem>>, vector<16x32xbf16>
      tpu.vector_store %arg8[%c0_24, %c0_25], %29 {strides = array<i32>} : memref<16x32xbf16, #tpu.memory_space<vmem>>, vector<16x32xbf16>,
    } else {
    }
    return
  }
  func.func @transform_0(%arg0: i32, %arg1: i32, %arg2: i32) -> (i32, i32) {
    %c0_i32 = arith.constant 0 : i32
    return %arg0, %arg2 : i32, i32
  }
  func.func @transform_1(%arg0: i32, %arg1: i32, %arg2: i32) -> (i32, i32) {
    %c0_i32 = arith.constant 0 : i32
    return %arg2, %arg1 : i32, i32
  }
  func.func @transform_2(%arg0: i32, %arg1: i32, %arg2: i32) -> (i32, i32) {
    %c0_i32 = arith.constant 0 : i32
    %c0_i32_0 = arith.constant 0 : i32
    return %c0_i32, %arg1 : i32, i32
  }
  func.func @transform_3(%arg0: i32, %arg1: i32, %arg2: i32) -> (i32, i32) {
    %c0_i32 = arith.constant 0 : i32
    %c0_i32_0 = arith.constant 0 : i32
    return %arg2, %c0_i32 : i32, i32
  }
  func.func @transform_4(%arg0: i32, %arg1: i32, %arg2: i32) -> (i32, i32) {
    %c0_i32 = arith.constant 0 : i32
    %c0_i32_0 = arith.constant 0 : i32
    return %c0_i32, %arg1 : i32, i32
  }
  func.func @transform_5(%arg0: i32, %arg1: i32, %arg2: i32) -> (i32, i32) {
    %c0_i32 = arith.constant 0 : i32
    return %arg0, %arg1 : i32, i32
  }
}

module attributes {stable_mosaic.version = 11 : i64} {
  func.func @_linear_kernel(%arg0: i32, %arg1: i32, %arg2: i32, %arg3: memref<16x32xbf16, #tpu.memory_space<vmem>>, %arg4: memref<32x32xbf16, #tpu.memory_space<vmem>>, %arg5: memref<1x32xf32, #tpu.memory_space<vmem>>, %arg6: memref<16x32xf32, #tpu.memory_space<vmem>>, %arg7: memref<16x32xf32, #tpu.memory_space<vmem>>) attributes {dimension_semantics = [#tpu.dimension_semantics<parallel>, #tpu.dimension_semantics<arbitrary>, #tpu.dimension_semantics<arbitrary>], iteration_bounds = array<i64: 1, 1, 1>, scalar_prefetch = 0 : i64, scratch_operands = 1 : i64, tpu.core_type = #tpu.core_type<tc>, window_params = [{transform_indices = @transform_0, window_bounds = array<i64: 16, 32>}, {transform_indices = @transform_1, window_bounds = array<i64: 32, 32>}, {transform_indices = @transform_2, window_bounds = array<i64: 1, 32>}, {transform_indices = @transform_3, window_bounds = array<i64: 16, 32>}]} {
    %c0_i32 = arith.constant 0 : i32
    %0 = arith.cmpi eq, %arg2, %c0_i32 : i32
    %1 = arith.extui %0 : i1 to i32
    %c0_i32_0 = arith.constant 0 : i32
    %2 = arith.cmpi ne, %1, %c0_i32_0 : i32
    scf.if %2 {
      %cst_10 = arith.constant 0.000000e+00 : f32
      %12 = vector.broadcast %cst_10 : f32 to vector<16x32xf32>
      %c0_11 = arith.constant 0 : index
      %c0_12 = arith.constant 0 : index
      %13 = vector.load %arg7[%c0_11, %c0_12] : memref<16x32xf32, #tpu.memory_space<vmem>>, vector<16x32xf32>
      tpu.vector_store %arg7[%c0_11, %c0_12], %12 {strides = array<i32>} : memref<16x32xf32, #tpu.memory_space<vmem>>, vector<16x32xf32>,
    } else {
    }
    %c0 = arith.constant 0 : index
    %c0_1 = arith.constant 0 : index
    %3 = vector.load %arg7[%c0, %c0_1] : memref<16x32xf32, #tpu.memory_space<vmem>>, vector<16x32xf32>
    %c0_2 = arith.constant 0 : index
    %c0_3 = arith.constant 0 : index
    %4 = vector.load %arg3[%c0_2, %c0_3] : memref<16x32xbf16, #tpu.memory_space<vmem>>, vector<16x32xbf16>
    %c0_4 = arith.constant 0 : index
    %c0_5 = arith.constant 0 : index
    %5 = vector.load %arg4[%c0_4, %c0_5] : memref<32x32xbf16, #tpu.memory_space<vmem>>, vector<32x32xbf16>
    %cst = arith.constant dense<0.000000e+00> : vector<16x32xf32>
    %6 = tpu.matmul %4, %5, %cst {dimension_numbers = #tpu.dot_dimension_numbers<[1], [0], [0], [1], [0, 0, 1, 1], [], []>} : vector<16x32xbf16>, vector<32x32xbf16>, vector<16x32xf32> -> vector<16x32xf32>
    %7 = arith.addf %3, %6 : vector<16x32xf32>
    %c0_6 = arith.constant 0 : index
    %c0_7 = arith.constant 0 : index
    %8 = vector.load %arg7[%c0_6, %c0_7] : memref<16x32xf32, #tpu.memory_space<vmem>>, vector<16x32xf32>
    tpu.vector_store %arg7[%c0_6, %c0_7], %7 {strides = array<i32>} : memref<16x32xf32, #tpu.memory_space<vmem>>, vector<16x32xf32>,
    %c0_i32_8 = arith.constant 0 : i32
    %9 = arith.cmpi eq, %arg2, %c0_i32_8 : i32
    %10 = arith.extui %9 : i1 to i32
    %c0_i32_9 = arith.constant 0 : i32
    %11 = arith.cmpi ne, %10, %c0_i32_9 : i32
    scf.if %11 {
      %c0_10 = arith.constant 0 : index
      %c0_11 = arith.constant 0 : index
      %12 = vector.load %arg7[%c0_10, %c0_11] : memref<16x32xf32, #tpu.memory_space<vmem>>, vector<16x32xf32>
      %c0_12 = arith.constant 0 : index
      %c0_13 = arith.constant 0 : index
      %13 = vector.load %arg5[%c0_12, %c0_13] : memref<1x32xf32, #tpu.memory_space<vmem>>, vector<1x32xf32>
      %14 = vector.broadcast %13 : vector<1x32xf32> to vector<16x32xf32>
      %15 = arith.addf %12, %14 : vector<16x32xf32>
      %c0_14 = arith.constant 0 : index
      %c0_15 = arith.constant 0 : index
      %16 = vector.load %arg6[%c0_14, %c0_15] : memref<16x32xf32, #tpu.memory_space<vmem>>, vector<16x32xf32>
      tpu.vector_store %arg6[%c0_14, %c0_15], %15 {strides = array<i32>} : memref<16x32xf32, #tpu.memory_space<vmem>>, vector<16x32xf32>,
    } else {
    }
    return
  }
  func.func @transform_0(%arg0: i32, %arg1: i32, %arg2: i32) -> (i32, i32) {
    %c0_i32 = arith.constant 0 : i32
    return %arg0, %arg2 : i32, i32
  }
  func.func @transform_1(%arg0: i32, %arg1: i32, %arg2: i32) -> (i32, i32) {
    %c0_i32 = arith.constant 0 : i32
    return %arg2, %arg1 : i32, i32
  }
  func.func @transform_2(%arg0: i32, %arg1: i32, %arg2: i32) -> (i32, i32) {
    %c0_i32 = arith.constant 0 : i32
    %c0_i32_0 = arith.constant 0 : i32
    return %c0_i32, %arg1 : i32, i32
  }
  func.func @transform_3(%arg0: i32, %arg1: i32, %arg2: i32) -> (i32, i32) {
    %c0_i32 = arith.constant 0 : i32
    return %arg0, %arg1 : i32, i32
  }
}

module attributes {stable_mosaic.version = 11 : i64} {
  func.func @_attn_kernel(%arg0: i32, %arg1: i32, %arg2: i32, %arg3: memref<1x2x8x8xbf16, #tpu.memory_space<vmem>>, %arg4: memref<1x2x8x8xbf16, #tpu.memory_space<vmem>>, %arg5: memref<1x2x8x8xbf16, #tpu.memory_space<vmem>>, %arg6: memref<1x2x8x8xbf16, #tpu.memory_space<vmem>>, %arg7: memref<1x8x8xf32, #tpu.memory_space<vmem>>) attributes {dimension_semantics = [#tpu.dimension_semantics<parallel>, #tpu.dimension_semantics<parallel>, #tpu.dimension_semantics<arbitrary>], iteration_bounds = array<i64: 2, 1, 2>, scalar_prefetch = 0 : i64, scratch_operands = 0 : i64, tpu.core_type = #tpu.core_type<tc>, window_params = [{transform_indices = @transform_0, window_bounds = array<i64: 1, 2, 8, 8>}, {transform_indices = @transform_1, window_bounds = array<i64: 1, 2, 8, 8>}, {transform_indices = @transform_2, window_bounds = array<i64: 1, 2, 8, 8>}, {transform_indices = @transform_3, window_bounds = array<i64: 1, 2, 8, 8>}, {transform_indices = @transform_4, window_bounds = array<i64: 1, 8, 8>}]} {
    %c0 = arith.constant 0 : index
    %c0_0 = arith.constant 0 : index
    %c0_1 = arith.constant 0 : index
    %c0_2 = arith.constant 0 : index
    %0 = vector.load %arg3[%c0, %c0_0, %c0_1, %c0_2] : memref<1x2x8x8xbf16, #tpu.memory_space<vmem>>, vector<1x2x8x8xbf16>
    %1 = vector.shape_cast %0 : vector<1x2x8x8xbf16> to vector<2x8x8xbf16>
    %c0_3 = arith.constant 0 : index
    %c0_4 = arith.constant 0 : index
    %c0_5 = arith.constant 0 : index
    %c0_6 = arith.constant 0 : index
    %2 = vector.load %arg4[%c0_3, %c0_4, %c0_5, %c0_6] : memref<1x2x8x8xbf16, #tpu.memory_space<vmem>>, vector<1x2x8x8xbf16>
    %3 = vector.shape_cast %2 : vector<1x2x8x8xbf16> to vector<2x8x8xbf16>
    %c0_7 = arith.constant 0 : index
    %c0_8 = arith.constant 0 : index
    %c0_9 = arith.constant 0 : index
    %c0_10 = arith.constant 0 : index
    %4 = vector.load %arg5[%c0_7, %c0_8, %c0_9, %c0_10] : memref<1x2x8x8xbf16, #tpu.memory_space<vmem>>, vector<1x2x8x8xbf16>
    %5 = vector.shape_cast %4 : vector<1x2x8x8xbf16> to vector<2x8x8xbf16>
    "tpu.trace_start"() <{level = 10 : i32, message = "hld,hsd->hls"}> : () -> ()
    %cst = arith.constant dense<0.000000e+00> : vector<2x8x8xf32>
    %6 = tpu.matmul %1, %3, %cst {dimension_numbers = #tpu.dot_dimension_numbers<[2], [2], [1], [1], [0, 0, 0, 1, 1, 1], [0], [0]>} : vector<2x8x8xbf16>, vector<2x8x8xbf16>, vector<2x8x8xf32> -> vector<2x8x8xf32>
    "tpu.trace_stop"() : () -> ()
    %cst_11 = arith.constant dense<0xFF800000> : vector<2x8xf32>
    %7 = vector.multi_reduction <maximumf>, %6, %cst_11 [2] : vector<2x8x8xf32> to vector<2x8xf32>
    %8 = vector.shape_cast %7 : vector<2x8xf32> to vector<2x8x1xf32>
    %9 = vector.broadcast %8 : vector<2x8x1xf32> to vector<2x8x8xf32>
    %10 = arith.subf %6, %9 : vector<2x8x8xf32>
    %11 = math.exp %10 : vector<2x8x8xf32>
    %cst_12 = arith.constant dense<0.000000e+00> : vector<2x8xf32>
    %12 = vector.multi_reduction <add>, %11, %cst_12 [2] : vector<2x8x8xf32> to vector<2x8xf32>
    %13 = vector.shape_cast %12 : vector<2x8xf32> to vector<2x8x1xf32>
    %14 = vector.broadcast %13 : vector<2x8x1xf32> to vector<2x8x8xf32>
    %15 = arith.divf %11, %14 : vector<2x8x8xf32>
    %16 = arith.truncf %15 : vector<2x8x8xf32> to vector<2x8x8xbf16>
    "tpu.trace_start"() <{level = 10 : i32, message = "hls,hsd->hld"}> : () -> ()
    %cst_13 = arith.constant dense<0.000000e+00> : vector<2x8x8xf32>
    %17 = tpu.matmul %16, %5, %cst_13 {dimension_numbers = #tpu.dot_dimension_numbers<[2], [1], [1], [2], [0, 0, 0, 1, 1, 2], [0], [0]>} : vector<2x8x8xbf16>, vector<2x8x8xbf16>, vector<2x8x8xf32> -> vector<2x8x8xf32>
    "tpu.trace_stop"() : () -> ()
    %18 = arith.truncf %17 : vector<2x8x8xf32> to vector<2x8x8xbf16>
    %c0_14 = arith.constant 0 : index
    %c0_15 = arith.constant 0 : index
    %c0_16 = arith.constant 0 : index
    %c0_17 = arith.constant 0 : index
    %19 = vector.load %arg6[%c0_14, %c0_15, %c0_16, %c0_17] : memref<1x2x8x8xbf16, #tpu.memory_space<vmem>>, vector<1x2x8x8xbf16>
    %20 = vector.shape_cast %19 : vector<1x2x8x8xbf16> to vector<2x8x8xbf16>
    %21 = vector.shape_cast %18 : vector<2x8x8xbf16> to vector<1x2x8x8xbf16>
    tpu.vector_store %arg6[%c0_14, %c0_15, %c0_16, %c0_17], %21 {strides = array<i32>} : memref<1x2x8x8xbf16, #tpu.memory_space<vmem>>, vector<1x2x8x8xbf16>,
    %c0_i32 = arith.constant 0 : i32
    %22 = arith.cmpi eq, %arg2, %c0_i32 : i32
    %23 = arith.extui %22 : i1 to i32
    %c0_i32_18 = arith.constant 0 : i32
    %24 = arith.cmpi ne, %23, %c0_i32_18 : i32
    scf.if %24 {
      %cst_27 = arith.constant 0.000000e+00 : f32
      %34 = vector.broadcast %cst_27 : f32 to vector<1x8x8xf32>
      %c0_28 = arith.constant 0 : index
      %c0_29 = arith.constant 0 : index
      %c0_30 = arith.constant 0 : index
      %35 = vector.load %arg7[%c0_28, %c0_29, %c0_30] : memref<1x8x8xf32, #tpu.memory_space<vmem>>, vector<1x8x8xf32>
      tpu.vector_store %arg7[%c0_28, %c0_29, %c0_30], %34 {strides = array<i32>} : memref<1x8x8xf32, #tpu.memory_space<vmem>>, vector<1x8x8xf32>,
    } else {
    }
    %c0_19 = arith.constant 0 : index
    %c0_20 = arith.constant 0 : index
    %c0_21 = arith.constant 0 : index
    %25 = vector.load %arg7[%c0_19, %c0_20, %c0_21] : memref<1x8x8xf32, #tpu.memory_space<vmem>>, vector<1x8x8xf32>
    %26 = vector.shape_cast %25 : vector<1x8x8xf32> to vector<8x8xf32>
    %cst_22 = arith.constant dense<0.000000e+00> : vector<8x8xf32>
    %27 = vector.multi_reduction <add>, %15, %cst_22 [0] : vector<2x8x8xf32> to vector<8x8xf32>
    %cst_23 = arith.constant 2.500000e-01 : f32
    %28 = vector.broadcast %cst_23 : f32 to vector<8x8xf32>
    %29 = arith.mulf %27, %28 : vector<8x8xf32>
    %30 = arith.addf %26, %29 : vector<8x8xf32>
    %c0_24 = arith.constant 0 : index
    %c0_25 = arith.constant 0 : index
    %c0_26 = arith.constant 0 : index
    %31 = vector.load %arg7[%c0_24, %c0_25, %c0_26] : memref<1x8x8xf32, #tpu.memory_space<vmem>>, vector<1x8x8xf32>
    %32 = vector.shape_cast %31 : vector<1x8x8xf32> to vector<8x8xf32>
    %33 = vector.shape_cast %30 : vector<8x8xf32> to vector<1x8x8xf32>
    tpu.vector_store %arg7[%c0_24, %c0_25, %c0_26], %33 {strides = array<i32>} : memref<1x8x8xf32, #tpu.memory_space<vmem>>, vector<1x8x8xf32>,
    return
  }
  func.func @transform_0(%arg0: i32, %arg1: i32, %arg2: i32) -> (i32, i32, i32, i32) {
    %c0_i32 = arith.constant 0 : i32
    %c0_i32_0 = arith.constant 0 : i32
    return %arg0, %arg2, %arg1, %c0_i32 : i32, i32, i32, i32
  }
  func.func @transform_1(%arg0: i32, %arg1: i32, %arg2: i32) -> (i32, i32, i32, i32) {
    %c0_i32 = arith.constant 0 : i32
    %c0_i32_0 = arith.constant 0 : i32
    %c0_i32_1 = arith.constant 0 : i32
    return %arg0, %arg2, %c0_i32, %c0_i32_0 : i32, i32, i32, i32
  }
  func.func @transform_2(%arg0: i32, %arg1: i32, %arg2: i32) -> (i32, i32, i32, i32) {
    %c0_i32 = arith.constant 0 : i32
    %c0_i32_0 = arith.constant 0 : i32
    %c0_i32_1 = arith.constant 0 : i32
    return %arg0, %arg2, %c0_i32, %c0_i32_0 : i32, i32, i32, i32
  }
  func.func @transform_3(%arg0: i32, %arg1: i32, %arg2: i32) -> (i32, i32, i32, i32) {
    %c0_i32 = arith.constant 0 : i32
    %c0_i32_0 = arith.constant 0 : i32
    return %arg0, %arg2, %arg1, %c0_i32 : i32, i32, i32, i32
  }
  func.func @transform_4(%arg0: i32, %arg1: i32, %arg2: i32) -> (i32, i32, i32) {
    %c0_i32 = arith.constant 0 : i32
    %c0_i32_0 = arith.constant 0 : i32
    return %arg0, %arg1, %c0_i32 : i32, i32, i32
  }
}

</mosaic_0001>

<bundles_post_ra>
// kernel: _lambda_.5
= control target key start
LH: loop header
LB: loop body
LE: loop exit
PB: predicated region body
PF: predicated region fallthrough
CT: control target
= control target key end

     0   :  { %vm35_vm0 = vcmask 31744   ;;  %vm27_vm1 = vcmask 261120   ;;  %v215_v1 = vmov 0.0   ;;  %vm145_vm2 = vcmask 1041408   ;;  %s287_s3 = inlined_call_operand.vmem [shape: bf16[32,4], index: 3, kind: input, shape index: {}]   ;;  %s288_s0 = inlined_call_operand.vmem [shape: bf16[16,32], index: 0, kind: input, shape index: {}]   ;;  %s289_s1 = inlined_call_operand.vmem [shape: bf16[32,32], index: 1, kind: input, shape index: {}]   ;;  %s290_s4 = inlined_call_operand.vmem [shape: bf16[4,32], index: 4, kind: input, shape index: {}]   ;;  %s291_s2 = inlined_call_operand.vmem [shape: f32[1,32], index: 2, kind: input, shape index: {}]   ;;  %s292_s5 = inlined_call_operand.vmem [shape: bf16[16,32], index: 5, kind: output, shape index: {}]  }
   0x1   :  { %v210_v0 = vld [vmem:[%s287_s3 + $0x8] sm:$0xff]  ;;  %36 = vst.msk [vmem:[#allocation3] sm:$0xff] %vm35_vm0, %v215_v1  ;;  %v209_v2 = vld [vmem:[%s287_s3] sm:$0xff]  ;;  %vm173_vm3 = vcmask 257024  }
   0x2   :  { %28 = vst.msk [vmem:[#allocation2] sm:$0xff] %vm27_vm1, %v215_v1  ;;  %74 = vmatpush.bf16.msra.mxu0 %v210_v0  ;;  %v208_v3 = vld [vmem:[%s288_s0] sm:$0xff]  ;;  %v212_v4 = vld [vmem:[%s289_s1 + $0x8] sm:$0xff] }
   0x3   :  { %29 = vst.msk [vmem:[#allocation2 + $0x8] sm:$0xff] %vm27_vm1, %v215_v1  ;;  %120 = vmatpush.bf16.msra.mxu1 %v212_v4  ;;  %v211_v5 = vld [vmem:[%s289_s1] sm:$0xff] }
   0x4   :  { %37 = vst.msk [vmem:[#allocation3 + $0x8] sm:$0xff] %vm35_vm0, %v215_v1  ;;  %v207_v6 = vld [vmem:[%s288_s0] sm:$0xff] }
   0x5   :  { %v140_v7 = vld [vmem:[%s290_s4] sm:$0x3] }
   0x6   :  { %75 = vmatpush.bf16.msra.mxu0 %v209_v2  ;;  %v147_v8 = vsel %vm145_vm2, %v140_v7, 0  ;;  %v214_v25 = vld [vmem:[%s291_s2] ss:$0 sm:$0xff] }
   0x7   :  { %121 = vmatpush.bf16.msra.mxu1 %v211_v5  ;;  %156 = vmatpush.bf16.msra.mxu2 %v147_v8 }
   0x8   :  { %v41_v9 = vld [vmem:[#allocation3] sm:$0xff] }
   0x9   :  { %192 = vmatmul.msk.bf16.vlgmr.msra.gmra.mxu0 %vm27_vm1, %v208_v3  ;;  %v87_v18 = vld [vmem:[#allocation2] sm:$0xff] }
   0xa   :  { %205 = vmatmul.msk.bf16.vlgmr.msra.gmra.mxu1 %vm27_vm1, %v207_v6  ;;  %v88_v21 = vld [vmem:[#allocation2 + $0x8] sm:$0xff] }
   0xb   :  { %v42_v12 = vld [vmem:[#allocation3 + $0x8] sm:$0xff] }
  0x86   :  { %v77_v10 = vpop.f32.mrf.mxu0 }
  0x87   :  { %v82_v11 = vadd.f32 %v77_v10, %v41_v9  ;;  %v123_v19 = vpop.f32.mrf.mxu1 }
  0x88   :  { %v128_v20 = vadd.f32 %v123_v19, %v87_v18 }
  0x89   :  { %85 = vst.msk [vmem:[#allocation3] sm:$0xff] %vm35_vm0, %v82_v11 }
  0x8a   :  { %130 = vst.msk [vmem:[#allocation2] sm:$0xff] %vm27_vm1, %v128_v20 }
  0x8e   :  { %v79_v13 = vpop.f32.mrf.mxu0 }
  0x8f   :  { %v83_v14 = vadd.f32 %v79_v13, %v42_v12  ;;  %v125_v22 = vpop.f32.mrf.mxu1 }
  0x90   :  { %v137_v15 = vld [vmem:[#allocation3] sm:$0xff]  ;;  %v129_v23 = vadd.f32 %v125_v22, %v88_v21 }
  0x91   :  { %86 = vst.msk [vmem:[#allocation3 + $0x8] sm:$0xff] %vm35_vm0, %v83_v14  ;;  %v135_v24 = vld [vmem:[#allocation2] sm:$0xff] }
  0x92   :  { %131 = vst.msk [vmem:[#allocation2 + $0x8] sm:$0xff] %vm27_vm1, %v129_v23 }
  0x98   :  { %v138_v16 = vld [vmem:[#allocation3 + $0x8] sm:$0xff] }
  0x99   :  { %v139_v17 = vpack.c.bf16 %v138_v16, %v137_v15  ;;  %v136_v30 = vld [vmem:[#allocation2 + $0x8] sm:$0xff] }
  0x9b   :  { %206 = vmatmul.msk.bf16.vlgmr.msra.gmra.mxu2 %vm35_vm0, %v139_v17 }
 0x11e   :  { %v158_v26 = vpop.f32.mrf.mxu2 }
 0x11f   :  { %v163_v27 = vadd.f32 %v158_v26, %v135_v24 }
 0x121   :  { %v169_v28 = vadd.f32 %v214_v25, %v163_v27 }
 0x123   :  { %v171_v29 = vpack.c.bf16 %v169_v28, %v169_v28 }
 0x125   :  { %174 = vst.msk [vmem:[%s292_s5] sm:$0xf] %vm173_vm3, %v171_v29 }
 0x126   :  { %v160_v31 = vpop.f32.mrf.mxu2 }
 0x127   :  { %v164_v32 = vadd.f32 %v160_v31, %v136_v30 }
 0x129   :  { %v170_v33 = vadd.f32 %v214_v25, %v164_v32 }
 0x12b   :  { %v172_v34 = vpack.c.bf16 %v170_v33, %v170_v33 }
 0x12d   :  { %175 = vst.msk [vmem:[%s292_s5 + $0x4] sm:$0xf] %vm173_vm3, %v172_v34 }

// kernel: _lambda_.9
= control target key start
LH: loop header
LB: loop body
LE: loop exit
PB: predicated region body
PF: predicated region fallthrough
CT: control target
= control target key end

     0   :  { %vm20_vm0 = vcmask 261120   ;;  %v148_v1 = vmov 0.0   ;;  %s194_s0 = inlined_call_operand.vmem [shape: bf16[16,32], index: 0, kind: input, shape index: {}]   ;;  %s195_s1 = inlined_call_operand.vmem [shape: bf16[32,32], index: 1, kind: input, shape index: {}]   ;;  %s196_s2 = inlined_call_operand.vmem [shape: f32[1,32], index: 2, kind: input, shape index: {}]   ;;  %s197_s3 = inlined_call_operand.hbm [shape: f32[16,32], index: 3, kind: output, shape index: {}]  }
   0x1   :  { %v116_v0 = vld [vmem:[%s195_s1 + $0x8] sm:$0xff]  ;;  %21 = vst.msk [vmem:[#allocation2] sm:$0xff] %vm20_vm0, %v148_v1 }
   0x2   :  { %8 = vsyncpa [#allocation4], 0  ;;  %58 = vmatpush.bf16.msra.mxu0 %v116_v0  ;;  %v115_v2 = vld [vmem:[%s195_s1] sm:$0xff]  ;;  %22 = vst.msk [vmem:[#allocation2 + $0x8] sm:$0xff] %vm20_vm0, %v148_v1  ;;  %s89_s22 = sshll.u32 %s197_s3, 4  ;;  %s151_s23 = smov 8   ;;  %s90_s22 = int_to_ptr.hbm [resolvable:$true] %s89_s22 }
   0x3   :  { %v114_v3 = vld [vmem:[%s194_s0] sm:$0xff]  ;;  %s149_s0 = smov [#allocation3]  }
   0x4   :  { %v121_v8 = vld [vmem:[%s196_s2] ss:$0 sm:$0xff]  ;;  %s87_s1 = sshll.u32 %s149_s0, 4  ;;  %s150_s2 = smov 128   ;;  %s88_s1 = int_to_ptr.vmem [resolvable:$true] %s87_s1 }
   0x6   :  { %59 = vmatpush.bf16.msra.mxu0 %v115_v2 }
   0x8   :  { %v23_v4 = vld [vmem:[#allocation2] sm:$0xff] }
   0x9   :  { %113 = vmatmul.msk.bf16.vlgmr.msra.gmra.mxu0 %vm20_vm0, %v114_v3  ;;  %v24_v7 = vld [vmem:[#allocation2 + $0x8] sm:$0xff] }
  0x86   :  { %v61_v5 = vpop.f32.mrf.mxu0 }
  0x87   :  { %v66_v6 = vadd.f32 %v61_v5, %v23_v4 }
  0x89   :  { %68 = vst.msk [vmem:[#allocation2] sm:$0xff] %vm20_vm0, %v66_v6 }
  0x8e   :  { %v63_v9 = vpop.f32.mrf.mxu0 }
  0x8f   :  { %v67_v10 = vadd.f32 %v63_v9, %v24_v7 }
  0x90   :  { %v73_v11 = vld [vmem:[#allocation2] sm:$0xff] }
  0x91   :  { %69 = vst.msk [vmem:[#allocation2 + $0x8] sm:$0xff] %vm20_vm0, %v67_v10  ;;  %v79_v12 = vadd.f32 %v121_v8, %v73_v11 }
  0x93   :  { %81 = vst.msk [vmem:[#allocation3] sm:$0xff] %vm20_vm0, %v79_v12 }
  0x98   :  { %v74_v13 = vld [vmem:[#allocation2 + $0x8] sm:$0xff] }
  0x99   :  { %v80_v14 = vadd.f32 %v121_v8, %v74_v13 }
  0x9b   :  { %82 = vst.msk [vmem:[#allocation3 + $0x8] sm:$0xff] %vm20_vm0, %v80_v14 }
  0x9c   :  { %95 = dma.vmem_to_hbm [thread:$0]  %s88_s1, 256, %s90_s22, [#allocation4], %s150_s2, %s150_s2, %s151_s23  }
  0x9d   :  { %146 = dma.done.wait [#allocation4], 256  }
  0x9e   :  { %147 = vsyncadd [#allocation4], 4294967040 }
  0x9f   :  { %100 = vsyncpa [#allocation4], 1 }

// kernel: _lambda_.8
= control target key start
LH: loop header
LB: loop body
LE: loop exit
PB: predicated region body
PF: predicated region fallthrough
CT: control target
= control target key end

     0   :  { %10 = vsyncpa [#allocation3], 0  ;;  %s1080_s0 = inlined_call_operand.vmem [shape: bf16[2,4,8,8], index: 0, kind: input, shape index: {}]   ;;  %s1081_s1 = inlined_call_operand.vmem [shape: bf16[2,4,8,8], index: 1, kind: input, shape index: {}]   ;;  %s1082_s2 = inlined_call_operand.vmem [shape: bf16[2,4,8,8], index: 2, kind: input, shape index: {}]   ;;  %s1083_s3 = inlined_call_operand.vmem [shape: bf16[2,4,8,8], index: 3, kind: output, shape index: {0}]   ;;  %s1084_s4 = inlined_call_operand.hbm [shape: f32[2,8,8], index: 4, kind: output, shape index: {1}]  }
   0x1   :  { %12 = vsyncpa [#allocation3 + $0x1], 0  ;;  %s925_s15 = smov 0   ;;  %s927_s16 = smov 0  }
   0x2   :  { %s929_s17 = smov 0   ;;  %s931_s18 = smov 0  }
   0x3   :  { %s933_s19 = smov 0   ;;  %s935_s20 = smov 0  }
   0x4   :  { %s937_s21 = smov 0   ;;  %s939_s22 = smov 0  }
   0x5 LB: > { %s696_s23 = sadd.s32 4294967295, %s897_s22   ;;  %s697_s24 = sadd.s32 4294967294, %s897_s22   ;;  %s897_s22 = sphi %s939_s22, %s18_s22   ;;  %s893_s21 = sphi %s937_s21, %s1093_s21   ;;  %s889_s20 = sphi %s935_s20, %s1092_s20   ;;  %s885_s19 = sphi %s933_s19, %s1091_s19   ;;  %s881_s18 = sphi %s931_s18, %s1090_s18   ;;  %s877_s17 = sphi %s929_s17, %s1089_s17   ;;  %s873_s16 = sphi %s927_s16, %s1088_s16   ;;  %s869_s15 = sphi %s925_s15, %s1087_s15  }
   0x6   : > { %s30_s25 = sadd.s32 1, %s889_s20  ;;  %s37_s26 = sadd.s32 1, %s893_s21 }
   0x7   : > { %p31_p0 = scmp.ge.s32.totalorder %s30_s25, 2  ;;  %p172_p1 = scmp.ne.s32.totalorder %s877_s17, %s873_s16 }
   0x8   : > { %p173_p2 = scmp.eq.s32.totalorder %s696_s23, 3  ;;  %p178_p4 = scmp.ne.s32.totalorder %s873_s16, %s869_s15 }
   0x9   : > { %s1095_s25 = smov (%p31_p0, %s30_s25), 0  ;;  %s1097_s26 = smov (!%p31_p0, %s37_s26), %s893_s21 }
   0xa   : > { %p974_p3 = por %p173_p2, %p172_p1  ;;  %p39_p5 = scmp.ge.s32.totalorder %s1097_s26, 2 }
   0xb   : > { %p179_p6 = scmp.eq.s32.totalorder %s697_s24, 3  ;;  %p700_p7 = scmp.ge.s32.totalorder %s897_s22, 1 }
   0xc   : > { %p239_p8 = scmp.lt.s32.totalorder %s897_s22, 5  ;;  %s1099_s26 = smov (%p39_p5, %s1097_s26), 0 }
   0xd   : > { %p984_p9 = por %p179_p6, %p178_p4  ;;  %s157_s29 = ssub.s32 %s893_s21, %s1099_s26 }
   0xe   : > { %p240_p10 = pnand %p700_p7, %p239_p8  ;;  %s162_s30 = sadd.s32 1, %s877_s17 }
   0xf   : > { %p160_p11 = scmp.eq.s32.totalorder %s157_s29, 0  ;;  %s299_s6 = sand.u32 (!%p240_p10), 1, %s873_s16  }
  0x10   : > { %243 = sbr.rel (%p240_p10) target bundleno = 593 (0x251), region = 32  ;;  %s702_s7 = sshll.u32 (!%p240_p10), %s881_s18, 1 }
  0x11   : > { %s992_s5 = scalar_select %p160_p11, %s877_s17, %s162_s30  }
  0x12   : > { %s998_s8 = sshll.u32 (!%p240_p10), %s299_s6, 3  ;;  %p303_p12 = scmp.lt.s32.totalorder (!%p240_p10), %s885_s19, 1 }
  0x13   : > { %p305_p13 = scmp.lt.s32.totalorder (!%p240_p10), %s702_s7, 3  ;;  %p718_p0 = scmp.ne.s32.totalorder (!%p240_p10), %s881_s18, 0 }
  0x15   : > { %s304_s9 = scalar_select %p303_p12, %s885_s19, 1  ;;  %vm355_vm0 = vcmask 64512   ;;  %vm447_vm1 = vcmask 1043456   ;;  %vm485_vm10 = vcmask 60416  }
  0x16   : > { %s1101_s7 = smov (!%p305_p13, %s702_s7), 3 }
  0x17   : > { %s703_s10 = sshll.u32 %s304_s9, 2 }
  0x18   : > { %s311_s11 = sadd.s32 %s703_s10, %s1101_s7 }
  0x19   : > { %s1002_s12 = sshll.u32 %s311_s11, 2 }
  0x1a   : > { %s323_s23 = scalar_lea.vmem %s1081_s1, %s1002_s12  ;;  %s313_s30 = scalar_lea.vmem %s1080_s0, %s1002_s12 }
  0x1b   : > { %v351_v0 = vld [vmem:[%s323_s23] sm:$0xf]  ;;  %v352_v1 = vld [vmem:[%s323_s23 + $0x4] sm:$0xf]  ;;  %s333_s10 = scalar_lea.vmem %s1082_s2, %s1002_s12  ;;  %s346_s14 = scalar_lea.vmem %s1083_s3, %s1002_s12 }
  0x1c   : > { %v360_v2 = vsel %vm355_vm0, %v351_v0, 0  ;;  %v379_v3 = vsel %vm355_vm0, %v352_v1, 0  ;;  %v349_v4 = vld [vmem:[%s313_s30] sm:$0xf]  ;;  %v350_v5 = vld [vmem:[%s313_s30 + $0x4] sm:$0xf] }
  0x1d   : > { %369 = vmatpush.bf16.xpose.msra.mxu0 %v360_v2  ;;  %388 = vmatpush.bf16.xpose.msra.mxu1 %v379_v3  ;;  %v353_v22 = vld [vmem:[%s333_s10] sm:$0xf]  ;;  %v354_v24 = vld [vmem:[%s333_s10 + $0x4] sm:$0xf]  ;;  %s301_s23 = scalar_lea.vmem [#allocation2], %s998_s8 }
  0x1e   : > { %v449_v23 = vsel %vm447_vm1, %v353_v22, 0  ;;  %v468_v25 = vsel %vm447_vm1, %v354_v24, 0 }
  0x1f   : > { %458 = vmatpush.bf16.msra.mxu2 %v449_v23  ;;  %477 = vmatpush.bf16.msra.mxu3 %v468_v25 }
  0x24   : > { %714 = vmatmul.msk.bf16.vlgmr.msra.gmra.mxu0 %vm355_vm0, %v349_v4  ;;  %715 = vmatmul.msk.bf16.vlgmr.msra.gmra.mxu1 %vm355_vm0, %v350_v5 }
  0xa1   : > { %v371_v6 = vpop.f32.mrf.mxu0  ;;  %v390_v7 = vpop.f32.mrf.mxu1 }
  0xa2   : > { %v394_v8 = vsel %vm355_vm0, %v371_v6, -inf  ;;  %v397_v9 = vsel %vm355_vm0, %v390_v7, -inf }
  0xa3   : > { %395 = vmax.xlane.f32.xlu0 %v394_v8 }
  0xa9   : > { %v373_v10 = vpop.f32.mrf.mxu0  ;;  %v392_v11 = vpop.f32.mrf.mxu1 }
  0xab   : > { %398 = vmax.xlane.f32.xlu0 %v397_v9 }
 0x116   : > { %v396_v12 = vpop.xlane.xlu0 %395 }
 0x117   : > { %v400_v13 = vsub.f32 %v371_v6, %v396_v12 }
 0x119   : > { %v402_v14 = vmul.f32 1.442695, %v400_v13 }
 0x11b   : > { %795 = vpow2.f32 %v402_v14 }
 0x11e   : > { %v399_v15 = vpop.xlane.xlu0 %398 }
 0x11f   : > { %v401_v16 = vsub.f32 %v390_v7, %v399_v15 }
 0x121   : > { %v796_v17 = vpop.eup %795  ;;  %v404_v18 = vmul.f32 1.442695, %v401_v16 }
 0x122   : > { %v406_v19 = vsel %vm355_vm0, %v796_v17, 0.0 }
 0x123   : > { %797 = vpow2.f32 %v404_v18  ;;  %407 = vadd.xlane.f32.xlu1 %v406_v19 }
 0x129   : > { %v798_v20 = vpop.eup %797 }
 0x12a   : > { %v409_v21 = vsel %vm355_vm0, %v798_v20, 0.0 }
 0x12b   : > { %410 = vadd.xlane.f32.xlu1 %v409_v21 }
 0x196   : > { %v408_v26 = vpop.xlane.xlu1 %407 }
 0x197   : > { %799 = vrcp.f32 %v408_v26  ;;  %v423_v31 = vand.u32 2147483648, %v408_v26  ;;  %v421_v33 = vand.u32 2147483647, %v408_v26  ;;  %vm417_vm3 = vweird.f32 %v408_v26 }
 0x199   : > { %v424_v36 = vor.u32 1.1754944e-38, %v423_v31  ;;  %vm422_vm5 = vcmp.eq.f32.partialorder %v421_v33, 8.507059e+37 }
 0x19d   : > { %v800_v27 = vpop.eup %799 }
 0x19e   : > { %v413_v28 = vmul.f32 %v800_v27, %v408_v26  ;;  %v411_v29 = vpop.xlane.xlu1 %410  ;;  %vm418_vm2 = vweird.f32 %v800_v27 }
 0x19f   : > { %801 = vrcp.f32 %v411_v29  ;;  %vm419_vm4 = vmor %vm417_vm3, %vm418_vm2  ;;  %v438_v42 = vand.u32 2147483648, %v411_v29  ;;  %v436_v44 = vand.u32 2147483647, %v411_v29  ;;  %vm432_vm7 = vweird.f32 %v411_v29 }
 0x1a0   : > { %v414_v30 = vsub.f32 1.0, %v413_v28 }
 0x1a1   : > { %v439_v47 = vor.u32 1.1754944e-38, %v438_v42  ;;  %vm437_vm9 = vcmp.eq.f32.partialorder %v436_v44, 8.507059e+37 }
 0x1a2   : > { %v415_v32 = vmul.f32 %v800_v27, %v414_v30 }
 0x1a4   : > { %v416_v34 = vadd.f32 %v800_v27, %v415_v32 }
 0x1a5   : > { %v802_v35 = vpop.eup %801 }
 0x1a6   : > { %v428_v37 = vmul.f32 %v802_v35, %v411_v29  ;;  %v420_v38 = vsel %vm419_vm4, %v800_v27, %v416_v34  ;;  %vm433_vm6 = vweird.f32 %v802_v35 }
 0x1a7   : > { %v425_v39 = vsel %vm422_vm5, %v424_v36, %v420_v38  ;;  %vm434_vm8 = vmor %vm432_vm7, %vm433_vm6 }
 0x1a8   : > { %v429_v40 = vsub.f32 1.0, %v428_v37  ;;  %v426_v41 = vmul.f32 %v796_v17, %v425_v39 }
 0x1aa   : > { %v430_v43 = vmul.f32 %v802_v35, %v429_v40  ;;  %v442_v45 = vpack.c.bf16 %v426_v41, %v426_v41 }
 0x1ac   : > { %v431_v46 = vadd.f32 %v802_v35, %v430_v43  ;;  %716 = vmatmul.msk.bf16.vlgmr.msra.gmra.mxu2 %vm355_vm0, %v442_v45 }
 0x1ae   : > { %v435_v48 = vsel %vm434_vm8, %v802_v35, %v431_v46 }
 0x1af   : > { %v440_v49 = vsel %vm437_vm9, %v439_v47, %v435_v48 }
 0x1b0   : > { %v441_v50 = vmul.f32 %v798_v20, %v440_v49 }
 0x1b2   : > { %v443_v51 = vpack.c.bf16 %v441_v50, %v441_v50 }
 0x1b4   : > { %717 = vmatmul.msk.bf16.vlgmr.msra.gmra.mxu3 %vm355_vm0, %v443_v51 }
 0x22f   : > { %v460_v52 = vpop.f32.mrf.mxu2 }
 0x230   : > { %v483_v53 = vpack.c.bf16 %v460_v52, %v460_v52 }
 0x232   : > { %486 = vst.msk [vmem:[%s346_s14] sm:$0xf] %vm485_vm10, %v483_v53 }
 0x237   : > { %v462_v54 = vpop.f32.mrf.mxu2  ;;  %v479_v55 = vpop.f32.mrf.mxu3 }
 0x238   : > { %v484_v56 = vpack.c.bf16 %v479_v55, %v479_v55 }
 0x23a   : > { %487 = vst.msk [vmem:[%s346_s14 + $0x4] sm:$0xf] %vm485_vm10, %v484_v56 }
 0x23b   : > { %491 = sbr.rel (%p718_p0) target bundleno = 578 (0x242), region = 36 }
 0x23f   : > { %v481_v57 = vpop.f32.mrf.mxu3 }
 0x240   : > { %v899_v58 = vmov 0.0  }
 0x241   : > { %492 = vst.msk [vmem:[%s301_s23] sm:$0xff] %vm355_vm0, %v899_v58 }
 0x242 PF: > { %v494_v59 = vsel %vm355_vm0, %v426_v41, 0.0  ;;  %v495_v60 = vsel %vm355_vm0, %v441_v50, 0.0  ;;  %s720_s12 = sshll.u32 %s885_s19, 3  ;;  %s530_s18 = sshll.u32 %s301_s23, 4  ;;  %s531_s18 = int_to_ptr.vmem [resolvable:$true] %s530_s18 }
 0x243   : > { %v496_v61 = vadd.f32 %v495_v60, %v494_v59  ;;  %s528_s8 = scalar_lea.hbm %s1084_s4, %s720_s12  ;;  %s513_s7 = scalar_lea.sflag [#allocation3], %s299_s6 }
 0x244   : > { %s532_s30 = sshll.u32 %s528_s8, 4  ;;  %s823_s13 = scalar_lea.hbm %s1084_s4, 16  ;;  %s533_s30 = int_to_ptr.hbm [resolvable:$true] %s532_s30 }
 0x245   : > { %v497_v63 = vmul.f32 0.25, %v496_v61  ;;  %s817_s9 = sshra.s32 %s533_s30, 4  ;;  %s818_s9 = int_to_ptr.hbm [resolvable:$true] %s817_s9 }
 0x246   : > { %s819_s19 = scalar_lea.hbm %s818_s9, 8  ;;  %p824_p5 = scmp.lt.s32.totalorder %s818_s9, %s1084_s4 }
 0x247   : > { %p820_p1 = scmp.ne.s32.totalorder %s818_s9, %s819_s19  ;;  %p825_p6 = scmp.lt.s32.totalorder %s823_s13, %s819_s19 }
 0x248   : > { %v493_v62 = vld [vmem:[%s301_s23] sm:$0xff] }
 0x249   : > { %v498_v0 = vadd.f32 %v497_v63, %v493_v62  ;;  %p821_p2 = pnand %p820_p1, %p974_p3  ;;  %p826_p7 = por %p825_p6, %p824_p5 }
 0x24b   : > { %499 = vst.msk [vmem:[%s301_s23] sm:$0xff] %vm355_vm0, %v498_v0  ;;  %p822_p4 = pneg %p821_p2 }
 0x24d   : > { %p827_p8 = pnand %p826_p7, %p822_p4 }
 0x24f   : > { %830 = shalt.err (!%p827_p8)
}
 0x250   : > { %723 = dma.vmem_to_hbm [thread:$0]  (%p974_p3), %s531_s18, 128, %s533_s30, %s513_s7  }
 0x251 PF: > { %p729_p10 = scmp.ge.s32.totalorder %s897_s22, 2  ;;  %s559_s6 = sand.u32 1, %s869_s15  }
 0x252   : > { %s560_s23 = scalar_lea.sflag [#allocation3], %s559_s6 }
 0x253   : > { %p726_p11 = pnand %p729_p10, %p984_p9 }
 0x255   : > { %p727_p12 = pneg %p726_p11 }
 0x257   : > { %864 = dma.done.wait (%p727_p12), %s560_s23, 128  }
 0x258   : > { %866 = vsyncadd (%p727_p12), %s560_s23, 4294967168  ;;  %s18_s22 = sadd.s32 1, %s897_s22   ;;  %s1087_s15 = smov %s873_s16 }
 0x259   : > { %p15_p13 = scmp.ge.s32.totalorder %s18_s22, 6   ;;  %s1088_s16 = smov %s877_s17 }
 0x25a   : > { %s1089_s17 = smov %s992_s5  ;;  %s1090_s18 = smov %s889_s20 }
 0x25b   : > { %s1091_s19 = smov %s893_s21  ;;  %s1092_s20 = smov %s1095_s25 }
 0x25c   : > { %s1093_s21 = smov %s1099_s26  ;;  %17 = sbr.rel (!%p15_p13) target bundleno = 5 (0x5), region = 89 }
 0x261   :  { %566 = vsyncpa [#allocation3], 1 }
 0x262   :  { %568 = vsyncpa [#allocation3 + $0x1], 1 }

</bundles_post_ra>
